<compile_context>
chip_gen: v7x
topology: tpu7x:2x2x1
jax: 0.10.0
libtpu: 0.0.40
codegen_flags: <defaults>
</compile_context>

<pallas_src>
import functools
import math

import numpy as np
import jax
import jax.numpy as jnp
from jax import lax
from jax.experimental import pallas as pl
from jax.experimental.pallas import tpu as pltpu

_LANE = 128
_MIB = 1024 * 1024


@functools.lru_cache(maxsize=None)
def _tpu_generation() -> int:
    """Best-effort TPU generation (5/6/7...) from the device kind string."""
    try:
        kind = jax.devices()[0].device_kind.lower()
        for g in (7, 6, 5, 4):
            if f"v{g}" in kind or f"tpu{g}" in kind:
                return g
    except Exception:
        pass
    return 6


@functools.lru_cache(maxsize=None)
def _build_pe_table(d_model: int, length: int, dtype=np.dtype(np.float32)):
    """Sin/cos table, shape (length, d_model), built in f64 on host then cast.
    Matches the PyTorch buffer (pe[:,0::2]=sin(pos*div_term), pe[:,1::2]=cos(...))."""
    j = np.arange(d_model)
    inv_freq = np.exp((2 * (j // 2)).astype(np.float64) * (-np.log(10000.0) / d_model))
    ang = np.arange(length, dtype=np.float64)[:, None] * inv_freq[None, :]
    pe = np.where(j % 2 == 0, np.sin(ang), np.cos(ang)).astype(np.float32)
    return jnp.asarray(pe, dtype=dtype)


def _pe_tile(seq0, rows, width, d_model, flat):
    """(rows, width) f32 tile of the positional-encoding table starting at
    (flat-)row `seq0`.  Dim-only quantities live on a (1, width) slab (hoisted);
    a single sin per element (cos folded in as a +pi/2 phase)."""
    lane = lax.broadcasted_iota(jnp.int32, (1, width), 1)            # (1, width)
    row = seq0 + lax.broadcasted_iota(jnp.int32, (rows, 1), 0)       # (rows, 1)
    dim = (lane & (d_model - 1)) if flat else lane                   # (1, width)
    inv_freq = jnp.exp((dim >> 1).astype(jnp.float32)
                       * (-2.0 * math.log(10000.0) / d_model))       # (1, width)
    phase = (dim & 1).astype(jnp.float32) * (math.pi / 2.0)          # (1, width)
    if flat:
        # width == 128; each 128-lane row holds 128/d_model consecutive positions.
        ld = d_model.bit_length() - 1                                # log2(d_model)
        pos_row = (row << (7 - ld)).astype(jnp.float32)              # (rows, 1)
        lane_term = (lane >> ld).astype(jnp.float32) * inv_freq + phase
    else:
        pos_row = row.astype(jnp.float32)
        lane_term = phase
    # One VPU mul + add per vreg, then one EUP sin per vreg.
    return jnp.sin(pos_row * inv_freq + lane_term)                   # (rows, width)


def _gen_kernel(x_ref, o_ref, *, d_model, rows_per_block, flat):
    # Block: (bb, rows_per_block, width); pe generated once and broadcast over bb.
    seq0 = pl.program_id(0) * rows_per_block
    pe = _pe_tile(seq0, rows_per_block, x_ref.shape[-1], d_model, flat)
    o_ref[...] = (x_ref[...].astype(jnp.float32) + pe[None]).astype(o_ref.dtype)


def _table_kernel(x_ref, pe_ref, o_ref):
    # Table-streaming path; pe block is (rows, width), broadcast over batch sub-axis.
    o_ref[...] = (x_ref[...].astype(jnp.float32)
                  + pe_ref[...].astype(jnp.float32)[None]).astype(o_ref.dtype)


@functools.lru_cache(maxsize=None)
def _inkernel_sincos_ok() -> bool:
    """Probe whether vector sin/cos lower on this Mosaic build.  The probe kernel is
    tiny and fixed-shape, so a failure here really is a lowering limitation (a
    misconfigured real kernel is not hidden by this)."""
    def k(x_ref, o_ref):
        o_ref[...] = jnp.sin(x_ref[...]) + jnp.cos(x_ref[...])
    try:
        x = jnp.zeros((8, _LANE), jnp.float32)
        jax.block_until_ready(
            pl.pallas_call(k, out_shape=jax.ShapeDtypeStruct((8, _LANE), jnp.float32))(x))
        return True
    except Exception:
        return False


def _pick_rows(total_rows: int, row_bytes: int, granule: int, target_bytes: int) -> int:
    rows = max(1, target_bytes // max(1, row_bytes))
    rows = max(granule, (rows // granule) * granule)
    return total_rows if rows >= total_rows else rows


def _call(kernel, inputs, in_specs, out_spec, out_shape, grid, vmem_limit, donate_x):
    kwargs = {"input_output_aliases": {0: 0}} if donate_x else {}
    return pl.pallas_call(
        kernel,
        out_shape=out_shape,
        grid=grid,
        in_specs=in_specs,
        out_specs=out_spec,
        compiler_params=pltpu.CompilerParams(
            dimension_semantics=("parallel", "parallel"),
            vmem_limit_bytes=int(vmem_limit),
        ),
        **kwargs,
    )(*inputs)


def positional_encoding_forward(x: jnp.ndarray, *, max_len: int = 5000,
                                block_bytes: int | None = None,
                                donate_x: bool = False) -> jnp.ndarray:
    """x: (batch, seq, d_model) -> x + positional encoding, same shape/dtype."""
    B, S, D = x.shape
    if S > max_len:
        raise ValueError(f"seq_len {S} exceeds max_len {max_len}")

    itemsize = x.dtype.itemsize
    granule = {4: 8, 2: 16, 1: 32}.get(itemsize, 8)        # sublane granularity per dtype
    gen = _tpu_generation()

    # Block-size / VMEM targets per generation (v7x needs bigger blocks, not v5e/v6e).
    if block_bytes is None:
        block_bytes = 6 * _MIB if gen >= 7 else 2 * _MIB
    phys_cap = (56 if gen >= 7 else 100) * _MIB
    vmem_limit = min(phys_cap, max(32 * _MIB, 7 * block_bytes))

    # Path selection: generated pe where transcendentals are free (f32 on v5e/v6e);
    # table-streaming (batch-resident pe in x.dtype) on v7x / sub-32-bit activations
    # or when sin/cos cannot be lowered.
    use_table = (not _inkernel_sincos_ok()) or gen >= 7 or itemsize < 4

    # Lane-dense flattening for d_model < 128.
    flat = (D < _LANE) and ((S * D) % _LANE == 0)
    if flat and not use_table and (D & (D - 1)) != 0:
        use_table = True        # non-pow2 D: flattened table path stays lane-dense w/o div/mod

    if flat:
        rows, width = (S * D) // _LANE, _LANE
        x_view = x.reshape(B, rows, width)
    else:
        rows, width = S, D      # last dim = full d_model (lane-dense when D % 128 == 0)
        x_view = x

    # Batch blocking: pack several batch elements per block when per-batch slabs are tiny.
    per_batch_bytes = rows * width * itemsize
    if per_batch_bytes <= block_bytes:
        bb = int(max(1, min(B, block_bytes // max(1, per_batch_bytes))))
        tr = rows
    else:
        bb = 1
        tr = _pick_rows(rows, width * itemsize, granule, block_bytes)

    grid = (pl.cdiv(rows, tr), pl.cdiv(B, bb))              # batch innermost -> pe tile resident
    xo_spec = pl.BlockSpec((bb, tr, width), lambda s, b: (b, s, 0))
    out_shape = jax.ShapeDtypeStruct((B, rows, width), x.dtype)

    if use_table:
        pe_dtype = np.dtype(x.dtype) if itemsize < 4 else np.dtype(np.float32)
        pe = _build_pe_table(D, S, pe_dtype).reshape(rows, width)
        out = _call(_table_kernel, (x_view, pe),
                    [xo_spec, pl.BlockSpec((tr, width), lambda s, b: (s, 0))],
                    xo_spec, out_shape, grid, vmem_limit, donate_x)
    else:
        kern = functools.partial(_gen_kernel, d_model=D, rows_per_block=tr, flat=flat)
        out = _call(kern, (x_view,), [xo_spec], xo_spec, out_shape, grid,
                    vmem_limit, donate_x)

    # NOTE: highest-leverage follow-up is fusing this add into the producer/consumer
    # kernel (embedding scale / first projection) to avoid a standalone RMW pass.
    return out.reshape(B, S, D)


if __name__ == "__main__":
    B, S, D = 2, 8, 32
    key = jax.random.PRNGKey(0)
    x = jax.random.normal(key, (B, S, D), dtype=jnp.float32)

    out = jax.block_until_ready(positional_encoding_forward(x))

    ref = x + _build_pe_table(D, S)[None, :, :]
    assert out.shape == (B, S, D) and out.dtype == x.dtype
    assert jnp.allclose(out, ref, atol=1e-4, rtol=1e-4), "mismatch vs reference"
    print("KERNEL_OK")
</pallas_src>

<mosaic_0001>
module attributes {stable_mosaic.version = 11 : i64} {
  func.func @k(%arg0: memref<8x128xf32, #tpu.memory_space<vmem>>, %arg1: memref<8x128xf32, #tpu.memory_space<vmem>>) attributes {dimension_semantics = [], scalar_prefetch = 0 : i64, scratch_operands = 0 : i64, tpu.core_type = #tpu.core_type<tc>} {
    %c0 = arith.constant 0 : index
    %c0_0 = arith.constant 0 : index
    %0 = vector.load %arg0[%c0, %c0_0] : memref<8x128xf32, #tpu.memory_space<vmem>>, vector<8x128xf32>
    %1 = math.sin %0 : vector<8x128xf32>
    %c0_1 = arith.constant 0 : index
    %c0_2 = arith.constant 0 : index
    %2 = vector.load %arg0[%c0_1, %c0_2] : memref<8x128xf32, #tpu.memory_space<vmem>>, vector<8x128xf32>
    %3 = math.cos %2 : vector<8x128xf32>
    %4 = arith.addf %1, %3 : vector<8x128xf32>
    %c0_3 = arith.constant 0 : index
    %c0_4 = arith.constant 0 : index
    %5 = vector.load %arg1[%c0_3, %c0_4] : memref<8x128xf32, #tpu.memory_space<vmem>>, vector<8x128xf32>
    tpu.vector_store %arg1[%c0_3, %c0_4], %4 {strides = array<i32>} : memref<8x128xf32, #tpu.memory_space<vmem>>, vector<8x128xf32>,
    return
  }
}

module attributes {stable_mosaic.version = 11 : i64} {
  func.func @_table_kernel(%arg0: i32, %arg1: i32, %arg2: memref<2x2x128xf32, #tpu.memory_space<vmem>>, %arg3: memref<2x128xf32, #tpu.memory_space<vmem>>, %arg4: memref<2x2x128xf32, #tpu.memory_space<vmem>>) attributes {dimension_semantics = [#tpu.dimension_semantics<parallel>, #tpu.dimension_semantics<parallel>], iteration_bounds = array<i64: 1, 1>, scalar_prefetch = 0 : i64, scratch_operands = 0 : i64, tpu.core_type = #tpu.core_type<tc>, window_params = [{transform_indices = @transform_0, window_bounds = array<i64: 2, 2, 128>}, {transform_indices = @transform_1, window_bounds = array<i64: 2, 128>}, {transform_indices = @transform_2, window_bounds = array<i64: 2, 2, 128>}]} {
    %c0 = arith.constant 0 : index
    %c0_0 = arith.constant 0 : index
    %c0_1 = arith.constant 0 : index
    %0 = vector.load %arg2[%c0, %c0_0, %c0_1] : memref<2x2x128xf32, #tpu.memory_space<vmem>>, vector<2x2x128xf32>
    %c0_2 = arith.constant 0 : index
    %c0_3 = arith.constant 0 : index
    %1 = vector.load %arg3[%c0_2, %c0_3] : memref<2x128xf32, #tpu.memory_space<vmem>>, vector<2x128xf32>
    %2 = vector.shape_cast %1 : vector<2x128xf32> to vector<1x2x128xf32>
    %3 = vector.broadcast %2 : vector<1x2x128xf32> to vector<2x2x128xf32>
    %4 = arith.addf %0, %3 : vector<2x2x128xf32>
    %c0_4 = arith.constant 0 : index
    %c0_5 = arith.constant 0 : index
    %c0_6 = arith.constant 0 : index
    %5 = vector.load %arg4[%c0_4, %c0_5, %c0_6] : memref<2x2x128xf32, #tpu.memory_space<vmem>>, vector<2x2x128xf32>
    tpu.vector_store %arg4[%c0_4, %c0_5, %c0_6], %4 {strides = array<i32>} : memref<2x2x128xf32, #tpu.memory_space<vmem>>, vector<2x2x128xf32>,
    return
  }
  func.func @transform_0(%arg0: i32, %arg1: i32) -> (i32, i32, i32) {
    %c0_i32 = arith.constant 0 : i32
    %c0_i32_0 = arith.constant 0 : i32
    return %arg1, %arg0, %c0_i32 : i32, i32, i32
  }
  func.func @transform_1(%arg0: i32, %arg1: i32) -> (i32, i32) {
    %c0_i32 = arith.constant 0 : i32
    %c0_i32_0 = arith.constant 0 : i32
    return %arg0, %c0_i32 : i32, i32
  }
  func.func @transform_2(%arg0: i32, %arg1: i32) -> (i32, i32, i32) {
    %c0_i32 = arith.constant 0 : i32
    %c0_i32_0 = arith.constant 0 : i32
    return %arg1, %arg0, %c0_i32 : i32, i32, i32
  }
}

</mosaic_0001>

<bundles_post_ra>
// kernel: tpu_custom_call.1
= control target key start
LH: loop header
LB: loop body
LE: loop exit
PB: predicated region body
PF: predicated region fallthrough
CT: control target
= control target key end

     0   :  { %6 = vsyncpa [#allocation3], 0  ;;  %s381_s0 = inlined_call_operand.hbm [shape: f32[8,128], index: 0, kind: input, shape index: {}]   ;;  %s382_s1 = inlined_call_operand.hbm [shape: f32[8,128], index: 1, kind: output, shape index: {}]  }
   0x1   :  { %7 = vsyncpa [#allocation4], 0  ;;  %s318_s6 = smov [#allocation2]   ;;  %s270_s10 = scalar_lea.hbm %s381_s0, 128 }
   0x2   :  { %s14_s7 = sshll.u32 %s318_s6, 4  ;;  %p271_p0 = scmp.ne.s32.totalorder %s381_s0, %s270_s10  ;;  %s15_s7 = int_to_ptr.vmem [resolvable:$true] %s14_s7 }
   0x3   :  { %p274_p1 = scmp.lt.u32.totalorder %s270_s10, %s381_s0 }
   0x5   :  { %p276_p2 = pnand %p274_p1, %p271_p0 }
   0x7   :  { %279 = shalt.err (!%p276_p2)
}
   0x8   :  { %s280_s15 = scalar_lea.vmem %s15_s7, 128  ;;  %p285_p4 = scmp.lt.s32.totalorder %s15_s7, %s15_s7 }
   0x9   :  { %p281_p3 = scmp.ne.s32.totalorder %s15_s7, %s280_s15  ;;  %p286_p5 = scmp.lt.s32.totalorder %s280_s15, %s280_s15 }
   0xb   :  { %p287_p6 = por %p286_p5, %p285_p4 }
   0xd   :  { %p288_p7 = pnand %p287_p6, %p281_p3 }
   0xf   :  { %291 = shalt.err (!%p288_p7)
}
  0x10   :  { %17 = dma.hbm_to_vmem [thread:$0]  %s381_s0, 128, %s15_s7, [#allocation3]  }
  0x11   :  { %314 = dma.done.wait [#allocation3], 128  }
  0x12   :  { %315 = vsyncadd [#allocation3], 4294967168  ;;  %v348_v0 = vld [vmem:[#allocation2] sm:$0xff]  ;;  %v319_v12 = vmov 683565275   ;;  %s325_s0 = smov [#allocation5]  }
  0x13   :  { %v25_v1 = vand.u32 2139095040, %v348_v0  ;;  %v22_v3 = vand.u32 2147483647, %v348_v0  ;;  %v320_v14 = vmov 2475754826   ;;  %vm24_vm7 = vcmp.lt.s32.totalorder %v348_v0, 0 }
  0x14   :  { %v321_v16 = vmov 2131351028   ;;  %v322_v18 = vmov 2102212464   ;;  %v323_v20 = vmov 920167782   ;;  %vm114_vm15 = vweird.f32 %v348_v0 }
  0x15   :  { %v26_v2 = vshrl.u32 %v25_v1, 23  ;;  %v29_v6 = vand.u32 8388607, %v22_v3  ;;  %v324_v27 = vmov 1326507024   ;;  %s237_s18 = sshll.u32 %s325_s0, 4  ;;  %s238_s18 = int_to_ptr.vmem [resolvable:$true] %s237_s18 }
  0x16   :  { %vm23_vm8 = vcmp.le.f32.partialorder %v22_v3, 0.7853982  ;;  %s292_s19 = scalar_lea.vmem %s238_s18, 128  ;;  %p297_p9 = scmp.lt.s32.totalorder %s238_s18, %s238_s18 }
  0x17   :  { %v246_v4 = vadd.s32 4294967169, %v26_v2  ;;  %v30_v9 = vor.u32 8388608, %v29_v6  ;;  %p293_p8 = scmp.ne.s32.totalorder %s238_s18, %s292_s19  ;;  %p298_p10 = scmp.lt.s32.totalorder %s292_s19, %s292_s19 }
  0x19   :  { %v32_v5 = vadd.s32 1, %v246_v4  ;;  %v70_v29 = vshll.u32 %v30_v9, 8  ;;  %p299_p11 = por %p298_p10, %p297_p9 }
  0x1b   :  { %vm33_vm0 = vcmp.gt.s32.totalorder %v32_v5, 0  ;;  %p300_p12 = pnand %p299_p11, %p293_p8 }
  0x1c   :  { %v34_v7 = vsel %vm33_vm0, %v32_v5, 0 }
  0x1d   :  { %v36_v8 = vand.u32 31, %v34_v7  ;;  %v35_v10 = vshrl.u32 %v34_v7, 5 }
  0x1f   :  { %v37_v11 = vsub.s32 32, %v36_v8  ;;  %v39_v13 = vshll.u32 %v319_v12, %v36_v8  ;;  %v42_v15 = vshll.u32 %v320_v14, %v36_v8  ;;  %v45_v17 = vshll.u32 %v321_v16, %v36_v8 }
  0x20   :  { %v48_v19 = vshll.u32 %v322_v18, %v36_v8  ;;  %v51_v21 = vshll.u32 %v323_v20, %v36_v8  ;;  %vm54_vm1 = vcmp.lt.s32.totalorder %v35_v10, 1  ;;  %vm57_vm2 = vcmp.lt.s32.totalorder %v35_v10, 4 }
  0x21   :  { %v38_v22 = vshrl.u32 %v319_v12, %v37_v11  ;;  %v40_v23 = vshrl.u32 %v320_v14, %v37_v11  ;;  %v43_v24 = vshrl.u32 %v321_v16, %v37_v11  ;;  %v46_v25 = vshrl.u32 %v322_v18, %v37_v11 }
  0x22   :  { %v49_v26 = vshrl.u32 %v323_v20, %v37_v11  ;;  %v52_v28 = vshrl.u32 %v324_v27, %v37_v11  ;;  %vm55_vm3 = vcmp.lt.s32.totalorder %v35_v10, 2  ;;  %vm56_vm4 = vcmp.lt.s32.totalorder %v35_v10, 3 }
  0x23   :  { %v41_v30 = vor.u32 %v40_v23, %v39_v13  ;;  %v44_v31 = vor.u32 %v43_v24, %v42_v15  ;;  %v47_v32 = vor.u32 %v46_v25, %v45_v17 }
  0x24   :  { %v50_v33 = vor.u32 %v49_v26, %v48_v19  ;;  %v53_v34 = vor.u32 %v52_v28, %v51_v21 }
  0x25   :  { %v58_v35 = vsel %vm54_vm1, %v38_v22, %v41_v30  ;;  %v59_v36 = vsel %vm57_vm2, %v47_v32, 2102212464  ;;  %v62_v37 = vsel %vm54_vm1, %v41_v30, %v44_v31  ;;  %v66_v38 = vsel %vm54_vm1, %v44_v31, %v47_v32 }
  0x26   :  { %v60_v39 = vsel %vm56_vm4, %v44_v31, %v59_v36  ;;  %v63_v40 = vsel %vm57_vm2, %v50_v33, 920167782  ;;  %v67_v41 = vsel %vm57_vm2, %v53_v34, 1326507024 }
  0x27   :  { %v64_v42 = vsel %vm56_vm4, %v47_v32, %v63_v40  ;;  %v68_v43 = vsel %vm56_vm4, %v50_v33, %v67_v41  ;;  %v61_v44 = vsel %vm55_vm3, %v58_v35, %v60_v39 }
  0x28   :  { %v65_v45 = vsel %vm55_vm3, %v62_v37, %v64_v42  ;;  %v69_v46 = vsel %vm55_vm3, %v66_v38, %v68_v43  ;;  %v77_v51 = vmul.u32 %v70_v29, %v61_v44 }
  0x29   :  { %v354_v47 = vmul.u32.u64.low %v70_v29, %v69_v46  ;;  %v355_v48 = vmul.u32.u64.high %v70_v29, %v69_v46, %v354_v47  ;;  %v357_v49 = vmul.u32.u64.low %v70_v29, %v65_v45  ;;  %v358_v50 = vmul.u32.u64.high %v70_v29, %v65_v45, %v357_v49 }
  0x2b   :  { %vm79_vm5 = vc.u32 %v355_v48, %v357_v49  ;;  %v80_v52 = vadd.s32 1, %v358_v50  ;;  %v78_v63 = vadd.s32 %v357_v49, %v355_v48 }
  0x2d   :  { %v81_v53 = vsel %vm79_vm5, %v80_v52, %v358_v50 }
  0x2e   :  { %v82_v54 = vadd.s32 %v81_v53, %v77_v51 }
  0x30   :  { %v83_v55 = vadd.s32 536870912, %v82_v54 }
  0x32   :  { %v84_v56 = vshrl.u32 %v83_v55, 30 }
  0x34   :  { %v85_v57 = vshll.u32 %v84_v56, 30  ;;  %v108_v13 = vsub.s32 4, %v84_v56 }
  0x36   :  { %v86_v58 = vsub.s32 %v82_v54, %v85_v57  ;;  %v109_v16 = vsel %vm24_vm7, %v108_v13, %v84_v56 }
  0x37   :  { %v111_v19 = vsel %vm23_vm8, 0, %v109_v16 }
  0x38   :  { %v88_v59 = vsub.s32 0, %v86_v58  ;;  %v115_v20 = vadd.s32 3, %v111_v19  ;;  %v219_v22 = vand.u32 3, %v111_v19 }
  0x3a   :  { %v247_v60 = vmin.u32 %v88_v59, %v86_v58  ;;  %v116_v21 = vand.u32 3, %v115_v20  ;;  %vm224_vm10 = vcmp.eq.s32.totalorder %v219_v22, 2  ;;  %vm221_vm12 = vcmp.eq.s32.totalorder %v219_v22, 0 }
  0x3b   :  { %vm220_vm14 = vcmp.lt.s32.totalorder %v219_v22, 2 }
  0x3c   :  { %v90_v61 = vclz %v247_v60  ;;  %vm121_vm9 = vcmp.eq.s32.totalorder %v116_v21, 2  ;;  %vm118_vm11 = vcmp.eq.s32.totalorder %v116_v21, 0  ;;  %vm117_vm13 = vcmp.lt.s32.totalorder %v116_v21, 2 }
  0x3e   :  { %v248_v62 = vadd.s32 4294967294, %v90_v61 }
  0x40   :  { %vm249_vm6 = vcmp.lt.s32.totalorder %v248_v62, 0 }
  0x41   :  { %v93_v1 = vsel %vm249_vm6, 0, %v248_v62 }
  0x42   :  { %v94_v2 = vsub.s32 32, %v93_v1  ;;  %v95_v4 = vshll.u32 %v86_v58, %v93_v1  ;;  %v98_v5 = vsub.s32 4294967266, %v93_v1 }
  0x44   :  { %v96_v6 = vshrl.u32 %v78_v63, %v94_v2  ;;  %v99_v7 = vadd.s32 127, %v98_v5 }
  0x46   :  { %v97_v8 = vor.u32 %v96_v6, %v95_v4  ;;  %v100_v9 = vshll.u32 %v99_v7, 23 }
  0x48   :  { %v101_v10 = vor.u32 4788187, %v100_v9  ;;  %v104_v11 = vcvt.s32.f32 %v97_v8 }
  0x4a   :  { %v102_v12 = vand.u32 2147483647, %v101_v10 }
  0x4c   :  { %v105_v14 = vmul.f32 %v104_v11, %v102_v12 }
  0x4e   :  { %v106_v15 = vxor.u32 2147483648, %v105_v14 }
  0x50   :  { %v107_v17 = vsel %vm24_vm7, %v106_v15, %v105_v14 }
  0x51   :  { %v110_v18 = vsel %vm23_vm8, %v348_v0, %v107_v17 }
  0x52   :  { %266 = vcosq.f32 %v110_v18 }
  0x53   :  { %268 = vsinq.f32 %v110_v18 }
  0x5c   :  { %v267_v23 = vpop.eup %266 }
  0x5d   :  { %v269_v24 = vpop.eup %268  ;;  %v122_v25 = vxor.u32 2147483648, %v267_v23 }
  0x5e   :  { %v119_v3 = vxor.u32 2147483648, %v269_v24 }
  0x5f   :  { %v123_v26 = vsel %vm121_vm9, %v122_v25, %v269_v24  ;;  %v226_v27 = vsel %vm224_vm10, %v122_v25, %v269_v24 }
  0x60   :  { %v120_v28 = vsel %vm118_vm11, %v267_v23, %v119_v3  ;;  %v223_v29 = vsel %vm221_vm12, %v267_v23, %v119_v3 }
  0x61   :  { %v124_v30 = vsel %vm117_vm13, %v120_v28, %v123_v26  ;;  %v227_v31 = vsel %vm220_vm14, %v223_v29, %v226_v27 }
  0x62   :  { %v125_v32 = vsel %vm114_vm15, nan, %v124_v30  ;;  %v228_v33 = vsel %vm114_vm15, nan, %v227_v31 }
  0x63   :  { %v229_v34 = vadd.f32 %v228_v33, %v125_v32 }
  0x65   :  { %230 = vst [vmem:[#allocation5] sm:$0xff] %v229_v34 }
  0x66   :  { %303 = shalt.err (!%p300_p12)
}
  0x67   :  { %s304_s22 = scalar_lea.hbm %s382_s1, 128 }
  0x68   :  { %p305_p13 = scmp.ne.s32.totalorder %s382_s1, %s304_s22  ;;  %p308_p0 = scmp.lt.u32.totalorder %s304_s22, %s382_s1 }
  0x6a   :  { %p310_p1 = pnand %p308_p0, %p305_p13 }
  0x6c   :  { %313 = shalt.err (!%p310_p1)
}
  0x6d   :  { %240 = dma.vmem_to_hbm [thread:$0]  %s238_s18, 128, %s382_s1, [#allocation4]  }
  0x6e   :  { %316 = dma.done.wait [#allocation4], 128  }
  0x6f   :  { %317 = vsyncadd [#allocation4], 4294967168 }
  0x70   :  { %244 = vsyncpa [#allocation3], 1 }
  0x71   :  { %245 = vsyncpa [#allocation4], 1 }

// kernel: tpu_custom_call.1
= control target key start
LH: loop header
LB: loop body
LE: loop exit
PB: predicated region body
PF: predicated region fallthrough
CT: control target
= control target key end

     0   :  { %7 = vsyncpa [#allocation3], 0  ;;  %s154_s0 = inlined_call_operand.hbm [shape: f32[2,2,128], index: 0, kind: input, shape index: {}]   ;;  %s155_s1 = inlined_call_operand.vmem [shape: f32[2,128], index: 1, kind: input, shape index: {}]   ;;  %s156_s2 = inlined_call_operand.hbm [shape: f32[2,2,128], index: 2, kind: output, shape index: {}]  }
   0x1   :  { %8 = vsyncpa [#allocation4], 0  ;;  %s102_s9 = smov [#allocation2]   ;;  %s54_s13 = scalar_lea.hbm %s154_s0, 64 }
   0x2   :  { %s14_s10 = sshll.u32 %s102_s9, 4  ;;  %p55_p0 = scmp.ne.s32.totalorder %s154_s0, %s54_s13  ;;  %s15_s10 = int_to_ptr.vmem [resolvable:$true] %s14_s10 }
   0x3   :  { %p58_p1 = scmp.lt.u32.totalorder %s54_s13, %s154_s0 }
   0x5   :  { %p60_p2 = pnand %p58_p1, %p55_p0 }
   0x7   :  { %63 = shalt.err (!%p60_p2)
}
   0x8   :  { %s64_s18 = scalar_lea.vmem %s15_s10, 64  ;;  %p69_p4 = scmp.lt.s32.totalorder %s15_s10, %s15_s10 }
   0x9   :  { %p65_p3 = scmp.ne.s32.totalorder %s15_s10, %s64_s18  ;;  %p70_p5 = scmp.lt.s32.totalorder %s64_s18, %s64_s18 }
   0xb   :  { %p71_p6 = por %p70_p5, %p69_p4 }
   0xd   :  { %p72_p7 = pnand %p71_p6, %p65_p3 }
   0xf   :  { %75 = shalt.err (!%p72_p7)
}
  0x10   :  { %s103_s19 = smov 32   ;;  %s104_s20 = smov 2  }
  0x11   :  { %20 = dma.hbm_to_vmem [thread:$0]  %s154_s0, 64, %s15_s10, [#allocation3], %s103_s19, %s103_s19, %s104_s20  }
  0x12   :  { %98 = dma.done.wait [#allocation3], 64  }
  0x13   :  { %99 = vsyncadd [#allocation3], 4294967232  ;;  %s105_s23 = smov [#allocation5]   ;;  %v26_v0 = vld [vmem:[#allocation2] sm:$0x3] }
  0x14   :  { %s38_s24 = sshll.u32 %s105_s23, 4  ;;  %v28_v1 = vld [vmem:[%s155_s1] sm:$0x3]  ;;  %v27_v2 = vld [vmem:[#allocation2 + $0x2] sm:$0x3]  ;;  %s39_s24 = int_to_ptr.vmem [resolvable:$true] %s38_s24 }
  0x15   :  { %v29_v3 = vadd.f32 %v28_v1, %v26_v0  ;;  %v30_v4 = vadd.f32 %v28_v1, %v27_v2  ;;  %s76_s27 = scalar_lea.vmem %s39_s24, 64  ;;  %p81_p9 = scmp.lt.s32.totalorder %s39_s24, %s39_s24 }
  0x16   :  { %p77_p8 = scmp.ne.s32.totalorder %s39_s24, %s76_s27  ;;  %p82_p10 = scmp.lt.s32.totalorder %s76_s27, %s76_s27 }
  0x17   :  { %31 = vst [vmem:[#allocation5] sm:$0x3] %v29_v3  ;;  %32 = vst [vmem:[#allocation5 + $0x2] sm:$0x3] %v30_v4 }
  0x18   :  { %p83_p11 = por %p82_p10, %p81_p9 }
  0x1a   :  { %p84_p12 = pnand %p83_p11, %p77_p8 }
  0x1c   :  { %87 = shalt.err (!%p84_p12)
}
  0x1d   :  { %s88_s29 = scalar_lea.hbm %s156_s2, 64 }
  0x1e   :  { %p89_p13 = scmp.ne.s32.totalorder %s156_s2, %s88_s29  ;;  %p92_p0 = scmp.lt.u32.totalorder %s88_s29, %s156_s2 }
  0x20   :  { %p94_p1 = pnand %p92_p0, %p89_p13 }
  0x22   :  { %97 = shalt.err (!%p94_p1)
}
  0x23   :  { %44 = dma.vmem_to_hbm [thread:$0]  %s39_s24, 64, %s156_s2, [#allocation4], %s103_s19, %s103_s19, %s104_s20  }
  0x24   :  { %100 = dma.done.wait [#allocation4], 64  }
  0x25   :  { %101 = vsyncadd [#allocation4], 4294967232 }
  0x26   :  { %48 = vsyncpa [#allocation3], 1 }
  0x27   :  { %49 = vsyncpa [#allocation4], 1 }

</bundles_post_ra>
